<compile_context>
chip_gen: v6e
topology: v6e:2x2x1
jax: 0.10.0
libtpu: 0.0.40
codegen_flags: <defaults>
</compile_context>

<pallas_src>
import jax
import jax.numpy as jnp
from jax import lax
from jax.experimental import pallas as pl
from jax.experimental.pallas import tpu as pltpu

EPS = 1e-5  # nn.LayerNorm default eps


def _cdiv(a, b):
    return -(-a // b)


def _round_up(a, b):
    return _cdiv(a, b) * b


def _vmem_capacity_bytes():
    try:
        return int(pltpu.get_tpu_info().vmem_capacity_bytes)
    except Exception:
        return 64 * 1024 * 1024  # conservative: v7x has 64 MiB per TensorCore


def _plan_tiles(N, D, x_dtype, w_dtype):
    """VMEM-budget-aware tiling -> (tile_rows, tn, n_row, n_col, vmem_limit)."""
    isx = jnp.dtype(x_dtype).itemsize
    isw = jnp.dtype(w_dtype).itemsize
    # dtype-aware sublane alignment: f32 -> 8, bf16 -> 16, int8/fp8 -> 32
    row_align = {4: 8, 2: 16, 1: 32}.get(isx, 8)

    cap = _vmem_capacity_bytes()
    # Working-set budget: stay well under the scoped limit so double-buffering
    # survives; prefer shrinking tiles over raising the limit.
    budget = min(int(cap * 0.55), 56 * 1024 * 1024)

    # --- W: resident (single copy, Buffered(1)) if it fits in half the budget,
    #     otherwise tile its output columns and double-buffer the column blocks.
    w_resident = D * D * isw
    if w_resident <= budget // 2:
        tn, n_col, w_bytes = D, 1, w_resident
    else:
        divisors = [c for c in (1024, 512, 256) if D % c == 0]
        if not divisors:
            tn, n_col, w_bytes = D, 1, w_resident  # awkward D: keep resident
        else:
            tn = next((c for c in divisors if 2 * D * c * isw <= budget // 2),
                      divisors[-1])
            n_col, w_bytes = D // tn, 2 * D * tn * isw

    # --- row tile from the remaining budget
    per_row = (2 * D * isx            # x tile (double-buffered)
               + 2 * tn * isx         # out tile (double-buffered)
               + D * isw              # LayerNorm scratch (matmul dtype)
               + 3 * max(D, tn) * 4)  # f32 temporaries headroom
    remaining = max(budget - w_bytes, per_row * row_align)
    row_cap = 2048 if D <= 512 else 1024  # bigger tiles in the HBM-bound regime
    tile_rows = max(min(remaining // per_row, row_cap), row_align)
    if tile_rows >= 512:
        tile_rows = (tile_rows // 256) * 256  # fill v6e/v7x 256x256 MXU tiles
    else:
        tile_rows = (tile_rows // row_align) * row_align
    tile_rows = min(tile_rows, _round_up(N, row_align))
    tile_rows = max((tile_rows // row_align) * row_align, row_align)

    n_row = _cdiv(N, tile_rows)
    # v7x shards the 'parallel' row axis across 2 TensorCores: prefer even counts.
    if n_row > 1 and n_row % 2 == 1:
        cand = _round_up(_cdiv(N, n_row + 1), row_align)
        if cand >= row_align and _cdiv(N, cand) % 2 == 0:
            tile_rows, n_row = cand, _cdiv(N, cand)

    est = (w_bytes
           + tile_rows * (2 * D * isx + 2 * tn * isx + D * isw)
           + 4 * tile_rows * max(D, tn) * 4
           + 4 * tn * 4)
    ceiling = int(cap * 7 // 8)  # never request more than physical VMEM (v7x: 64 MiB)
    vmem_limit = min(ceiling, max(32 * 1024 * 1024, int(est * 1.3)))
    return tile_rows, tn, n_row, n_col, vmem_limit


def _residual_ln_linear_kernel(x_ref, w_ref, b_ref, o_ref, ln_ref):
    # x_ref: (tile_rows, D)   w_ref: (D, tn)   b_ref: (1, tn) f32
    # o_ref: (tile_rows, tn)  ln_ref: (tile_rows, D) scratch in matmul dtype
    D = x_ref.shape[-1]
    tn = o_ref.shape[-1]
    j = pl.program_id(1)

    # LayerNorm once per row tile (column axis is innermost / 'arbitrary').
    # gamma/beta are folded into W'/b' in the wrapper, so only normalization
    # remains here. One-pass sum / sum-of-squares -> independent XLU reductions.
    @pl.when(j == 0)
    def _():
        xf = x_ref[...].astype(jnp.float32)
        s1 = jnp.sum(xf, axis=-1, keepdims=True)
        s2 = jnp.sum(xf * xf, axis=-1, keepdims=True)
        mean = s1 * (1.0 / D)
        var = s2 * (1.0 / D) - mean * mean
        inv = lax.rsqrt(var + EPS)
        ln_ref[...] = ((xf - mean) * inv).astype(ln_ref.dtype)

    # sub_layer = Linear: (tile_rows, D) @ (D, tn) on the MXU, f32 accumulate.
    y = jnp.dot(ln_ref[...], w_ref[...], preferred_element_type=jnp.float32)

    # Dropout(p=0) is the identity.
    # TODO(synk): for p > 0, draw the mask with pltpu.prng_seed/prng_random_bits
    # and scale by 1/(1-p).

    # Residual + folded bias in one VPU pass.
    col0 = pl.multiple_of(j * tn, tn)
    x_res = x_ref[:, pl.ds(col0, tn)].astype(jnp.float32)
    o_ref[...] = (y + x_res + b_ref[...]).astype(o_ref.dtype)


def residual_connection(x, gamma, beta, w, b, *, force_bf16_matmul=False):
    """x: (B, S, D) -> (B, S, D).  sub_layer == Linear(D, D) applied as
    normed @ w + b (w already laid out (in, out))."""
    B, S, D = x.shape
    N = B * S

    # Fold the LayerNorm affine into the static Linear weights (zero runtime cost):
    #   (x_hat * gamma + beta) @ W + b  ==  x_hat @ (gamma[:,None] * W) + (beta @ W + b)
    w_f32 = w.astype(jnp.float32)
    mm_dtype = jnp.bfloat16 if force_bf16_matmul else w.dtype  # opt-in bf16 MXU path
    w_folded = (gamma.astype(jnp.float32)[:, None] * w_f32).astype(mm_dtype)
    b_folded = (beta.astype(jnp.float32) @ w_f32 + b.astype(jnp.float32)).reshape(1, D)

    tile_rows, tn, n_row, n_col, vmem_limit = _plan_tiles(N, D, x.dtype,
                                                          w_folded.dtype)
    n_pad = n_row * tile_rows
    x2 = x.reshape(N, D)
    if n_pad != N:
        x2 = jnp.pad(x2, ((0, n_pad - N), (0, 0)))  # last tile padded; sliced off below

    def build(single_buffer_params):
        # Constant-index params only need a single VMEM copy.
        opt = ({"pipeline_mode": pl.Buffered(1)}
               if (single_buffer_params and n_col == 1) else {})
        return pl.pallas_call(
            _residual_ln_linear_kernel,
            out_shape=jax.ShapeDtypeStruct((n_pad, D), x.dtype),
            grid=(n_row, n_col),
            in_specs=[
                pl.BlockSpec((tile_rows, D), lambda i, j: (i, 0)),      # x rows
                pl.BlockSpec((D, tn), lambda i, j: (0, j), **opt),      # W' columns
                pl.BlockSpec((1, tn), lambda i, j: (0, j), **opt),      # b' columns
            ],
            out_specs=pl.BlockSpec((tile_rows, tn), lambda i, j: (i, j)),
            scratch_shapes=[pltpu.VMEM((tile_rows, D), w_folded.dtype)],
            input_output_aliases={0: 0},  # output reuses x2's HBM buffer
            compiler_params=pltpu.CompilerParams(
                dimension_semantics=("parallel", "arbitrary"),
                vmem_limit_bytes=vmem_limit),
        )

    try:
        out = build(True)(x2, w_folded, b_folded)
    except Exception:
        # Fallback if this Mosaic build rejects single-buffer pipeline_mode.
        out = build(False)(x2, w_folded, b_folded)

    return out[:N].reshape(B, S, D)


def reference(x, gamma, beta, w, b):
    xf = x.astype(jnp.float32)
    mean = jnp.mean(xf, axis=-1, keepdims=True)
    var = jnp.mean((xf - mean) ** 2, axis=-1, keepdims=True)
    normed = (xf - mean) * lax.rsqrt(var + EPS) * gamma + beta
    y = jnp.einsum("bsd,de->bse", normed, w.astype(jnp.float32)) + b
    return (y + xf).astype(x.dtype)


if __name__ == "__main__":
    B, S, D = 2, 8, 128  # batch=2, seq=8, d_embed=128

    key = jax.random.PRNGKey(0)
    kx, kg, kb, kw, kbias = jax.random.split(key, 5)

    x = jax.random.normal(kx, (B, S, D), dtype=jnp.float32)
    # LayerNorm params (slightly off 1/0 so they matter)
    gamma = 1.0 + 0.1 * jax.random.normal(kg, (D,), dtype=jnp.float32)
    beta = 0.1 * jax.random.normal(kb, (D,), dtype=jnp.float32)
    # sub_layer = Linear(D, D) params
    w = jax.random.normal(kw, (D, D), dtype=jnp.float32) / jnp.sqrt(D)
    b = 0.1 * jax.random.normal(kbias, (D,), dtype=jnp.float32)

    out = residual_connection(x, gamma, beta, w, b)
    out = jax.block_until_ready(out)

    ref = reference(x, gamma, beta, w, b)
    assert out.shape == (B, S, D)
    assert jnp.allclose(out, ref, atol=2e-4, rtol=2e-4), float(
        jnp.max(jnp.abs(out - ref)))

    print("KERNEL_OK")
</pallas_src>

<mosaic_0001>
module attributes {stable_mosaic.version = 11 : i64} {
  func.func @_residual_ln_linear_kernel(%arg0: i32, %arg1: i32, %arg2: memref<16x128xf32, #tpu.memory_space<vmem>>, %arg3: memref<128x128xf32, #tpu.memory_space<vmem>>, %arg4: memref<1x128xf32, #tpu.memory_space<vmem>>, %arg5: memref<16x128xf32, #tpu.memory_space<vmem>>, %arg6: memref<16x128xf32, #tpu.memory_space<vmem>>) attributes {dimension_semantics = [#tpu.dimension_semantics<parallel>, #tpu.dimension_semantics<arbitrary>], iteration_bounds = array<i64: 1, 1>, scalar_prefetch = 0 : i64, scratch_operands = 1 : i64, tpu.core_type = #tpu.core_type<tc>, window_params = [{transform_indices = @transform_0, window_bounds = array<i64: 16, 128>}, {pipeline_mode = #tpu.pipeline_mode<synchronous>, transform_indices = @transform_1, window_bounds = array<i64: 128, 128>}, {pipeline_mode = #tpu.pipeline_mode<synchronous>, transform_indices = @transform_2, window_bounds = array<i64: 1, 128>}, {transform_indices = @transform_3, window_bounds = array<i64: 16, 128>}]} {
    %c0_i32 = arith.constant 0 : i32
    %0 = arith.cmpi eq, %arg1, %c0_i32 : i32
    %1 = arith.extui %0 : i1 to i32
    %c0_i32_0 = arith.constant 0 : i32
    %2 = arith.cmpi ne, %1, %c0_i32_0 : i32
    scf.if %2 {
      %c0_9 = arith.constant 0 : index
      %c0_10 = arith.constant 0 : index
      %15 = vector.load %arg2[%c0_9, %c0_10] : memref<16x128xf32, #tpu.memory_space<vmem>>, vector<16x128xf32>
      %cst_11 = arith.constant dense<0.000000e+00> : vector<16xf32>
      %16 = vector.multi_reduction <add>, %15, %cst_11 [1] : vector<16x128xf32> to vector<16xf32>
      %17 = vector.shape_cast %16 : vector<16xf32> to vector<16x1xf32>
      %18 = arith.mulf %15, %15 : vector<16x128xf32>
      %cst_12 = arith.constant dense<0.000000e+00> : vector<16xf32>
      %19 = vector.multi_reduction <add>, %18, %cst_12 [1] : vector<16x128xf32> to vector<16xf32>
      %20 = vector.shape_cast %19 : vector<16xf32> to vector<16x1xf32>
      %cst_13 = arith.constant 7.812500e-03 : f32
      %21 = vector.broadcast %cst_13 : f32 to vector<16x1xf32>
      %22 = arith.mulf %17, %21 : vector<16x1xf32>
      %cst_14 = arith.constant 7.812500e-03 : f32
      %23 = vector.broadcast %cst_14 : f32 to vector<16x1xf32>
      %24 = arith.mulf %20, %23 : vector<16x1xf32>
      %25 = arith.mulf %22, %22 : vector<16x1xf32>
      %26 = arith.subf %24, %25 : vector<16x1xf32>
      %cst_15 = arith.constant 9.99999974E-6 : f32
      %27 = vector.broadcast %cst_15 : f32 to vector<16x1xf32>
      %28 = arith.addf %26, %27 : vector<16x1xf32>
      %29 = math.rsqrt %28 : vector<16x1xf32>
      %30 = vector.broadcast %22 : vector<16x1xf32> to vector<16x128xf32>
      %31 = arith.subf %15, %30 : vector<16x128xf32>
      %32 = vector.broadcast %29 : vector<16x1xf32> to vector<16x128xf32>
      %33 = arith.mulf %31, %32 : vector<16x128xf32>
      %c0_16 = arith.constant 0 : index
      %c0_17 = arith.constant 0 : index
      %34 = vector.load %arg6[%c0_16, %c0_17] : memref<16x128xf32, #tpu.memory_space<vmem>>, vector<16x128xf32>
      tpu.vector_store %arg6[%c0_16, %c0_17], %33 {strides = array<i32>} : memref<16x128xf32, #tpu.memory_space<vmem>>, vector<16x128xf32>,
    } else {
    }
    %c0 = arith.constant 0 : index
    %c0_1 = arith.constant 0 : index
    %3 = vector.load %arg6[%c0, %c0_1] : memref<16x128xf32, #tpu.memory_space<vmem>>, vector<16x128xf32>
    %c0_2 = arith.constant 0 : index
    %c0_3 = arith.constant 0 : index
    %4 = vector.load %arg3[%c0_2, %c0_3] : memref<128x128xf32, #tpu.memory_space<vmem>>, vector<128x128xf32>
    %cst = arith.constant dense<0.000000e+00> : vector<16x128xf32>
    %5 = tpu.matmul %3, %4, %cst {dimension_numbers = #tpu.dot_dimension_numbers<[1], [0], [0], [1], [0, 0, 1, 1], [], []>} : vector<16x128xf32>, vector<128x128xf32>, vector<16x128xf32> -> vector<16x128xf32>
    %c128_i32 = arith.constant 128 : i32
    %6 = arith.muli %arg1, %c128_i32 : i32
    %7 = tpu.assume_multiple %6, 128 : i32
    %c0_4 = arith.constant 0 : index
    %8 = arith.index_cast %7 : i32 to index
    %9 = vector.load %arg2[%c0_4, %8] : memref<16x128xf32, #tpu.memory_space<vmem>>, vector<16x128xf32>
    %10 = arith.addf %5, %9 : vector<16x128xf32>
    %c0_5 = arith.constant 0 : index
    %c0_6 = arith.constant 0 : index
    %11 = vector.load %arg4[%c0_5, %c0_6] : memref<1x128xf32, #tpu.memory_space<vmem>>, vector<1x128xf32>
    %12 = vector.broadcast %11 : vector<1x128xf32> to vector<16x128xf32>
    %13 = arith.addf %10, %12 : vector<16x128xf32>
    %c0_7 = arith.constant 0 : index
    %c0_8 = arith.constant 0 : index
    %14 = vector.load %arg5[%c0_7, %c0_8] : memref<16x128xf32, #tpu.memory_space<vmem>>, vector<16x128xf32>
    tpu.vector_store %arg5[%c0_7, %c0_8], %13 {strides = array<i32>} : memref<16x128xf32, #tpu.memory_space<vmem>>, vector<16x128xf32>,
    return
  }
  func.func @transform_0(%arg0: i32, %arg1: i32) -> (i32, i32) {
    %c0_i32 = arith.constant 0 : i32
    %c0_i32_0 = arith.constant 0 : i32
    return %arg0, %c0_i32 : i32, i32
  }
  func.func @transform_1(%arg0: i32, %arg1: i32) -> (i32, i32) {
    %c0_i32 = arith.constant 0 : i32
    %c0_i32_0 = arith.constant 0 : i32
    return %c0_i32, %arg1 : i32, i32
  }
  func.func @transform_2(%arg0: i32, %arg1: i32) -> (i32, i32) {
    %c0_i32 = arith.constant 0 : i32
    %c0_i32_0 = arith.constant 0 : i32
    return %c0_i32, %arg1 : i32, i32
  }
  func.func @transform_3(%arg0: i32, %arg1: i32) -> (i32, i32) {
    %c0_i32 = arith.constant 0 : i32
    return %arg0, %arg1 : i32, i32
  }
}

module attributes {stable_mosaic.version = 11 : i64} {
  func.func @_residual_ln_linear_kernel(%arg0: i32, %arg1: i32, %arg2: memref<16x128xf32, #tpu.memory_space<vmem>>, %arg3: memref<128x128xf32, #tpu.memory_space<vmem>>, %arg4: memref<1x128xf32, #tpu.memory_space<vmem>>, %arg5: memref<16x128xf32, #tpu.memory_space<vmem>>, %arg6: memref<16x128xf32, #tpu.memory_space<vmem>>) attributes {dimension_semantics = [#tpu.dimension_semantics<parallel>, #tpu.dimension_semantics<arbitrary>], iteration_bounds = array<i64: 1, 1>, scalar_prefetch = 0 : i64, scratch_operands = 1 : i64, tpu.core_type = #tpu.core_type<tc>, window_params = [{transform_indices = @transform_0, window_bounds = array<i64: 16, 128>}, {transform_indices = @transform_1, window_bounds = array<i64: 128, 128>}, {transform_indices = @transform_2, window_bounds = array<i64: 1, 128>}, {transform_indices = @transform_3, window_bounds = array<i64: 16, 128>}]} {
    %c0_i32 = arith.constant 0 : i32
    %0 = arith.cmpi eq, %arg1, %c0_i32 : i32
    %1 = arith.extui %0 : i1 to i32
    %c0_i32_0 = arith.constant 0 : i32
    %2 = arith.cmpi ne, %1, %c0_i32_0 : i32
    scf.if %2 {
      %c0_9 = arith.constant 0 : index
      %c0_10 = arith.constant 0 : index
      %15 = vector.load %arg2[%c0_9, %c0_10] : memref<16x128xf32, #tpu.memory_space<vmem>>, vector<16x128xf32>
      %cst_11 = arith.constant dense<0.000000e+00> : vector<16xf32>
      %16 = vector.multi_reduction <add>, %15, %cst_11 [1] : vector<16x128xf32> to vector<16xf32>
      %17 = vector.shape_cast %16 : vector<16xf32> to vector<16x1xf32>
      %18 = arith.mulf %15, %15 : vector<16x128xf32>
      %cst_12 = arith.constant dense<0.000000e+00> : vector<16xf32>
      %19 = vector.multi_reduction <add>, %18, %cst_12 [1] : vector<16x128xf32> to vector<16xf32>
      %20 = vector.shape_cast %19 : vector<16xf32> to vector<16x1xf32>
      %cst_13 = arith.constant 7.812500e-03 : f32
      %21 = vector.broadcast %cst_13 : f32 to vector<16x1xf32>
      %22 = arith.mulf %17, %21 : vector<16x1xf32>
      %cst_14 = arith.constant 7.812500e-03 : f32
      %23 = vector.broadcast %cst_14 : f32 to vector<16x1xf32>
      %24 = arith.mulf %20, %23 : vector<16x1xf32>
      %25 = arith.mulf %22, %22 : vector<16x1xf32>
      %26 = arith.subf %24, %25 : vector<16x1xf32>
      %cst_15 = arith.constant 9.99999974E-6 : f32
      %27 = vector.broadcast %cst_15 : f32 to vector<16x1xf32>
      %28 = arith.addf %26, %27 : vector<16x1xf32>
      %29 = math.rsqrt %28 : vector<16x1xf32>
      %30 = vector.broadcast %22 : vector<16x1xf32> to vector<16x128xf32>
      %31 = arith.subf %15, %30 : vector<16x128xf32>
      %32 = vector.broadcast %29 : vector<16x1xf32> to vector<16x128xf32>
      %33 = arith.mulf %31, %32 : vector<16x128xf32>
      %c0_16 = arith.constant 0 : index
      %c0_17 = arith.constant 0 : index
      %34 = vector.load %arg6[%c0_16, %c0_17] : memref<16x128xf32, #tpu.memory_space<vmem>>, vector<16x128xf32>
      tpu.vector_store %arg6[%c0_16, %c0_17], %33 {strides = array<i32>} : memref<16x128xf32, #tpu.memory_space<vmem>>, vector<16x128xf32>,
    } else {
    }
    %c0 = arith.constant 0 : index
    %c0_1 = arith.constant 0 : index
    %3 = vector.load %arg6[%c0, %c0_1] : memref<16x128xf32, #tpu.memory_space<vmem>>, vector<16x128xf32>
    %c0_2 = arith.constant 0 : index
    %c0_3 = arith.constant 0 : index
    %4 = vector.load %arg3[%c0_2, %c0_3] : memref<128x128xf32, #tpu.memory_space<vmem>>, vector<128x128xf32>
    %cst = arith.constant dense<0.000000e+00> : vector<16x128xf32>
    %5 = tpu.matmul %3, %4, %cst {dimension_numbers = #tpu.dot_dimension_numbers<[1], [0], [0], [1], [0, 0, 1, 1], [], []>} : vector<16x128xf32>, vector<128x128xf32>, vector<16x128xf32> -> vector<16x128xf32>
    %c128_i32 = arith.constant 128 : i32
    %6 = arith.muli %arg1, %c128_i32 : i32
    %7 = tpu.assume_multiple %6, 128 : i32
    %c0_4 = arith.constant 0 : index
    %8 = arith.index_cast %7 : i32 to index
    %9 = vector.load %arg2[%c0_4, %8] : memref<16x128xf32, #tpu.memory_space<vmem>>, vector<16x128xf32>
    %10 = arith.addf %5, %9 : vector<16x128xf32>
    %c0_5 = arith.constant 0 : index
    %c0_6 = arith.constant 0 : index
    %11 = vector.load %arg4[%c0_5, %c0_6] : memref<1x128xf32, #tpu.memory_space<vmem>>, vector<1x128xf32>
    %12 = vector.broadcast %11 : vector<1x128xf32> to vector<16x128xf32>
    %13 = arith.addf %10, %12 : vector<16x128xf32>
    %c0_7 = arith.constant 0 : index
    %c0_8 = arith.constant 0 : index
    %14 = vector.load %arg5[%c0_7, %c0_8] : memref<16x128xf32, #tpu.memory_space<vmem>>, vector<16x128xf32>
    tpu.vector_store %arg5[%c0_7, %c0_8], %13 {strides = array<i32>} : memref<16x128xf32, #tpu.memory_space<vmem>>, vector<16x128xf32>,
    return
  }
  func.func @transform_0(%arg0: i32, %arg1: i32) -> (i32, i32) {
    %c0_i32 = arith.constant 0 : i32
    %c0_i32_0 = arith.constant 0 : i32
    return %arg0, %c0_i32 : i32, i32
  }
  func.func @transform_1(%arg0: i32, %arg1: i32) -> (i32, i32) {
    %c0_i32 = arith.constant 0 : i32
    %c0_i32_0 = arith.constant 0 : i32
    return %c0_i32, %arg1 : i32, i32
  }
  func.func @transform_2(%arg0: i32, %arg1: i32) -> (i32, i32) {
    %c0_i32 = arith.constant 0 : i32
    %c0_i32_0 = arith.constant 0 : i32
    return %c0_i32, %arg1 : i32, i32
  }
  func.func @transform_3(%arg0: i32, %arg1: i32) -> (i32, i32) {
    %c0_i32 = arith.constant 0 : i32
    return %arg0, %arg1 : i32, i32
  }
}

</mosaic_0001>

<bundles_post_ra>
// kernel: tpu_custom_call.1
= control target key start
LH: loop header
LB: loop body
LE: loop exit
PB: predicated region body
PF: predicated region fallthrough
CT: control target
= control target key end

     0   :  { %8 = vsyncpa [#allocation4], 0  ;;  %s395_s0 = inlined_call_operand.hbm [shape: f32[16,128], index: 0, kind: input, shape index: {}, may-alias: {0,3}]   ;;  %s396_s1 = inlined_call_operand.hbm [shape: f32[128,128], index: 1, kind: input, shape index: {}]   ;;  %s397_s2 = inlined_call_operand.vmem [shape: f32[1,128], index: 2, kind: input, shape index: {}]   ;;  %s398_s3 = inlined_call_operand.hbm [shape: f32[16,128], index: 3, kind: output, shape index: {}, may-alias: {0,3}]  }
   0x1   :  { %9 = vsyncpa [#allocation7], 0 }
   0x2   :  { %10 = vsyncpa [#allocation5], 0  ;;  %s335_s12 = smov [#allocation3]  }
   0x3   :  { %s16_s13 = sshll.u32 %s335_s12, 4  ;;  %s17_s13 = int_to_ptr.vmem [resolvable:$true] %s16_s13 }
   0x4   :  { %s277_s14 = scalar_lea.vmem %s17_s13, 256  ;;  %p282_p1 = scmp.lt.s32.totalorder %s17_s13, %s17_s13 }
   0x5   :  { %p278_p0 = scmp.ne.s32.totalorder %s17_s13, %s277_s14  ;;  %p283_p2 = scmp.lt.s32.totalorder %s277_s14, %s277_s14 }
   0x7   :  { %p284_p3 = por %p283_p2, %p282_p1 }
   0x9   :  { %p285_p4 = pnand %p284_p3, %p278_p0 }
   0xb   :  { %288 = shalt.err (!%p285_p4)
}
   0xc   :  { %s336_s15 = smov 128   ;;  %s337_s16 = smov 8  }
   0xd   :  { %22 = dma.hbm_to_vmem [thread:$0]  %s395_s0, 256, %s17_s13, [#allocation4], %s336_s15, %s336_s15, %s337_s16  }
   0xe   :  { %s338_s19 = smov [#allocation6]  }
   0xf   :  { %s28_s20 = sshll.u32 %s338_s19, 4  ;;  %s29_s20 = int_to_ptr.vmem [resolvable:$true] %s28_s20 }
  0x10   :  { %s297_s21 = scalar_lea.vmem %s29_s20, 2048  ;;  %p302_p6 = scmp.lt.s32.totalorder %s29_s20, %s29_s20 }
  0x11   :  { %p298_p5 = scmp.ne.s32.totalorder %s29_s20, %s297_s21  ;;  %p303_p7 = scmp.lt.s32.totalorder %s297_s21, %s297_s21 }
  0x13   :  { %p304_p8 = por %p303_p7, %p302_p6 }
  0x15   :  { %p305_p9 = pnand %p304_p8, %p298_p5 }
  0x17   :  { %308 = shalt.err (!%p305_p9)
}
  0x18   :  { %34 = dma.hbm_to_vmem [thread:$0]  %s396_s1, 2048, %s29_s20, [#allocation7], %s336_s15, %s336_s15, %s337_s16  }
  0x19   :  { %329 = dma.done.wait [#allocation4], 256  }
  0x1a   :  { %330 = vsyncadd [#allocation4], 4294967040 }
  0x1b   :  { %331 = dma.done.wait [#allocation7], 2048  }
  0x1c   :  { %332 = vsyncadd [#allocation7], 4294965248  ;;  %v372_v0 = vld [vmem:[#allocation3] sm:$0xff]  ;;  %v374_v1 = vld [vmem:[#allocation3 + $0x8] sm:$0xff]  ;;  %s339_s24 = smov [#allocation8]  }
  0x1d   :  { %v94_v2 = vld [vmem:[#allocation6 + $0x78] sm:$0xff]  ;;  %49 = vadd.xlane.f32.xlu0 %v372_v0  ;;  %v53_v3 = vmul.f32 %v372_v0, %v372_v0  ;;  %v93_v4 = vld [vmem:[#allocation6 + $0x70] sm:$0xff]  ;;  %v54_v5 = vmul.f32 %v374_v1, %v374_v1  ;;  %v92_v6 = vld [vmem:[#allocation6 + $0x68] sm:$0xff]  ;;  %s192_s25 = sshll.u32 %s339_s24, 4  ;;  %s193_s25 = int_to_ptr.vmem [resolvable:$true] %s192_s25 }
  0x1e   :  { %225 = vmatprep.subr.mxu0 %v94_v2  ;;  %v91_v7 = vld [vmem:[#allocation6 + $0x60] sm:$0xff]  ;;  %v90_v8 = vld [vmem:[#allocation6 + $0x58] sm:$0xff]  ;;  %v89_v9 = vld [vmem:[#allocation6 + $0x50] sm:$0xff]  ;;  %s309_s26 = scalar_lea.vmem %s193_s25, 256  ;;  %p314_p11 = scmp.lt.s32.totalorder %s193_s25, %s193_s25 }
  0x1f   :  { %226 = vmatpush3.msra.mxu0 %v94_v2  ;;  %55 = vadd.xlane.f32.xlu1 %v53_v3  ;;  %v88_v10 = vld [vmem:[#allocation6 + $0x48] sm:$0xff]  ;;  %v87_v11 = vld [vmem:[#allocation6 + $0x40] sm:$0xff]  ;;  %v86_v12 = vld [vmem:[#allocation6 + $0x38] sm:$0xff]  ;;  %p310_p10 = scmp.ne.s32.totalorder %s193_s25, %s309_s26  ;;  %p315_p12 = scmp.lt.s32.totalorder %s309_s26, %s309_s26 }
  0x20   :  { %227 = vmatprep.subr.mxu0 %v93_v4  ;;  %v85_v13 = vld [vmem:[#allocation6 + $0x30] sm:$0xff]  ;;  %v84_v14 = vld [vmem:[#allocation6 + $0x28] sm:$0xff]  ;;  %v83_v15 = vld [vmem:[#allocation6 + $0x20] sm:$0xff] }
  0x21   :  { %228 = vmatpush3.msra.mxu0 %v93_v4  ;;  %51 = vadd.xlane.f32.xlu0 %v374_v1  ;;  %v82_v16 = vld [vmem:[#allocation6 + $0x18] sm:$0xff]  ;;  %v81_v17 = vld [vmem:[#allocation6 + $0x10] sm:$0xff]  ;;  %v80_v18 = vld [vmem:[#allocation6 + $0x8] sm:$0xff]  ;;  %p316_p13 = por %p315_p12, %p314_p11 }
  0x22   :  { %229 = vmatprep.subr.mxu0 %v92_v6  ;;  %v79_v19 = vld [vmem:[#allocation6] sm:$0xff]  ;;  %v206_v41 = vld [vmem:[%s397_s2] ss:$0 sm:$0xff] }
  0x23   :  { %57 = vadd.xlane.f32.xlu1 %v54_v5  ;;  %230 = vmatpush3.msra.mxu0 %v92_v6  ;;  %p317_p0 = pnand %p316_p13, %p310_p10 }
  0x24   :  { %231 = vmatprep.subr.mxu0 %v91_v7 }
  0x25   :  { %232 = vmatpush3.msra.mxu0 %v91_v7 }
  0x26   :  { %233 = vmatprep.subr.mxu0 %v90_v8 }
  0x27   :  { %234 = vmatpush3.msra.mxu0 %v90_v8 }
  0x28   :  { %235 = vmatprep.subr.mxu0 %v89_v9 }
  0x29   :  { %236 = vmatpush3.msra.mxu0 %v89_v9 }
  0x2a   :  { %237 = vmatprep.subr.mxu0 %v88_v10 }
  0x2b   :  { %238 = vmatpush3.msra.mxu0 %v88_v10 }
  0x2c   :  { %239 = vmatprep.subr.mxu0 %v87_v11 }
  0x2d   :  { %240 = vmatpush3.msra.mxu0 %v87_v11 }
  0x2e   :  { %241 = vmatprep.subr.mxu0 %v86_v12 }
  0x2f   :  { %242 = vmatpush3.msra.mxu0 %v86_v12 }
  0x30   :  { %243 = vmatprep.subr.mxu0 %v85_v13 }
  0x31   :  { %244 = vmatpush3.msra.mxu0 %v85_v13 }
  0x32   :  { %245 = vmatprep.subr.mxu0 %v84_v14 }
  0x33   :  { %246 = vmatpush3.msra.mxu0 %v84_v14 }
  0x34   :  { %247 = vmatprep.subr.mxu0 %v83_v15 }
  0x35   :  { %248 = vmatpush3.msra.mxu0 %v83_v15 }
  0x36   :  { %249 = vmatprep.subr.mxu0 %v82_v16 }
  0x37   :  { %250 = vmatpush3.msra.mxu0 %v82_v16 }
  0x38   :  { %251 = vmatprep.subr.mxu0 %v81_v17 }
  0x39   :  { %252 = vmatpush3.msra.mxu0 %v81_v17 }
  0x3a   :  { %253 = vmatprep.subr.mxu0 %v80_v18 }
  0x3b   :  { %254 = vmatpush3.msra.mxu0 %v80_v18 }
  0x3c   :  { %255 = vmatprep.subr.mxu0 %v79_v19 }
  0x3d   :  { %256 = vmatpush3.msra.mxu0 %v79_v19 }
  0xa6   :  { %v50_v20 = vpop.xlane.xlu0 %49 }
  0xa7   :  { %v59_v21 = vmul.f32 0.0078125, %v50_v20 }
  0xa8   :  { %v56_v22 = vpop.xlane.xlu1 %55 }
  0xa9   :  { %v63_v23 = vmul.f32 %v59_v21, %v59_v21  ;;  %v61_v24 = vmul.f32 0.0078125, %v56_v22  ;;  %v71_v34 = vsub.f32 %v372_v0, %v59_v21 }
  0xaa   :  { %v52_v25 = vpop.xlane.xlu0 %51 }
  0xab   :  { %v65_v26 = vsub.f32 %v61_v24, %v63_v23  ;;  %v60_v27 = vmul.f32 0.0078125, %v52_v25 }
  0xac   :  { %v58_v28 = vpop.xlane.xlu1 %57 }
  0xad   :  { %v67_v29 = vadd.f32 1e-05, %v65_v26  ;;  %v64_v30 = vmul.f32 %v60_v27, %v60_v27  ;;  %v62_v31 = vmul.f32 0.0078125, %v58_v28  ;;  %v72_v37 = vsub.f32 %v374_v1, %v60_v27 }
  0xaf   :  { %265 = vrsqrt.f32 %v67_v29  ;;  %v66_v32 = vsub.f32 %v62_v31, %v64_v30 }
  0xb1   :  { %v68_v33 = vadd.f32 1e-05, %v66_v32 }
  0xb3   :  { %267 = vrsqrt.f32 %v68_v33 }
  0xbc   :  { %v266_v35 = vpop.eup %265 }
  0xbd   :  { %v73_v36 = vmul.f32 %v266_v35, %v71_v34 }
  0xbf   :  { %257 = vmatprep.mubr.f32.mxu0 %v73_v36 }
  0xc0   :  { %v268_v38 = vpop.eup %267 }
  0xc1   :  { %v74_v39 = vmul.f32 %v268_v38, %v72_v37 }
  0xc3   :  { %258 = vmatmul.mubr.f32.vlgmr.msra.gmra.mxu0 %v74_v39 }
 0x183   :  { %v259_v40 = vpop.f32.mrf.mxu0 }
 0x184   :  { %v173_v42 = vadd.f32 %v259_v40, %v374_v1 }
 0x185   :  { %v167_v43 = vpop.f32.mrf.mxu0 }
 0x186   :  { %v184_v44 = vadd.f32 %v206_v41, %v173_v42  ;;  %v168_v45 = vadd.f32 %v167_v43, %v372_v0 }
 0x188   :  { %186 = vst [vmem:[#allocation8 + $0x8] sm:$0xff] %v184_v44  ;;  %v183_v46 = vadd.f32 %v206_v41, %v168_v45 }
 0x18a   :  { %185 = vst [vmem:[#allocation8] sm:$0xff] %v183_v46 }
 0x18b   :  { %320 = shalt.err (!%p317_p0)
}
 0x18c   :  { %198 = dma.vmem_to_hbm [thread:$0]  %s193_s25, 256, %s398_s3, [#allocation5], %s336_s15, %s336_s15, %s337_s16  }
 0x18d   :  { %333 = dma.done.wait [#allocation5], 256  }
 0x18e   :  { %334 = vsyncadd [#allocation5], 4294967040 }
 0x18f   :  { %202 = vsyncpa [#allocation4], 1 }
 0x190   :  { %203 = vsyncpa [#allocation7], 1 }
 0x191   :  { %204 = vsyncpa [#allocation5], 1 }

// kernel: tpu_custom_call.1
= control target key start
LH: loop header
LB: loop body
LE: loop exit
PB: predicated region body
PF: predicated region fallthrough
CT: control target
= control target key end

     0   :  { %8 = vsyncpa [#allocation4], 0  ;;  %s395_s0 = inlined_call_operand.hbm [shape: f32[16,128], index: 0, kind: input, shape index: {}, may-alias: {0,3}]   ;;  %s396_s1 = inlined_call_operand.hbm [shape: f32[128,128], index: 1, kind: input, shape index: {}]   ;;  %s397_s2 = inlined_call_operand.vmem [shape: f32[1,128], index: 2, kind: input, shape index: {}]   ;;  %s398_s3 = inlined_call_operand.hbm [shape: f32[16,128], index: 3, kind: output, shape index: {}, may-alias: {0,3}]  }
   0x1   :  { %9 = vsyncpa [#allocation7], 0 }
   0x2   :  { %10 = vsyncpa [#allocation5], 0  ;;  %s335_s12 = smov [#allocation3]  }
   0x3   :  { %s16_s13 = sshll.u32 %s335_s12, 4  ;;  %s17_s13 = int_to_ptr.vmem [resolvable:$true] %s16_s13 }
   0x4   :  { %s277_s14 = scalar_lea.vmem %s17_s13, 256  ;;  %p282_p1 = scmp.lt.s32.totalorder %s17_s13, %s17_s13 }
   0x5   :  { %p278_p0 = scmp.ne.s32.totalorder %s17_s13, %s277_s14  ;;  %p283_p2 = scmp.lt.s32.totalorder %s277_s14, %s277_s14 }
   0x7   :  { %p284_p3 = por %p283_p2, %p282_p1 }
   0x9   :  { %p285_p4 = pnand %p284_p3, %p278_p0 }
   0xb   :  { %288 = shalt.err (!%p285_p4)
}
   0xc   :  { %s336_s15 = smov 128   ;;  %s337_s16 = smov 8  }
   0xd   :  { %22 = dma.hbm_to_vmem [thread:$0]  %s395_s0, 256, %s17_s13, [#allocation4], %s336_s15, %s336_s15, %s337_s16  }
   0xe   :  { %s338_s19 = smov [#allocation6]  }
   0xf   :  { %s28_s20 = sshll.u32 %s338_s19, 4  ;;  %s29_s20 = int_to_ptr.vmem [resolvable:$true] %s28_s20 }
  0x10   :  { %s297_s21 = scalar_lea.vmem %s29_s20, 2048  ;;  %p302_p6 = scmp.lt.s32.totalorder %s29_s20, %s29_s20 }
  0x11   :  { %p298_p5 = scmp.ne.s32.totalorder %s29_s20, %s297_s21  ;;  %p303_p7 = scmp.lt.s32.totalorder %s297_s21, %s297_s21 }
  0x13   :  { %p304_p8 = por %p303_p7, %p302_p6 }
  0x15   :  { %p305_p9 = pnand %p304_p8, %p298_p5 }
  0x17   :  { %308 = shalt.err (!%p305_p9)
}
  0x18   :  { %34 = dma.hbm_to_vmem [thread:$0]  %s396_s1, 2048, %s29_s20, [#allocation7], %s336_s15, %s336_s15, %s337_s16  }
  0x19   :  { %329 = dma.done.wait [#allocation4], 256  }
  0x1a   :  { %330 = vsyncadd [#allocation4], 4294967040 }
  0x1b   :  { %331 = dma.done.wait [#allocation7], 2048  }
  0x1c   :  { %332 = vsyncadd [#allocation7], 4294965248  ;;  %v372_v0 = vld [vmem:[#allocation3] sm:$0xff]  ;;  %v374_v1 = vld [vmem:[#allocation3 + $0x8] sm:$0xff]  ;;  %s339_s24 = smov [#allocation8]  }
  0x1d   :  { %v94_v2 = vld [vmem:[#allocation6 + $0x78] sm:$0xff]  ;;  %49 = vadd.xlane.f32.xlu0 %v372_v0  ;;  %v53_v3 = vmul.f32 %v372_v0, %v372_v0  ;;  %v93_v4 = vld [vmem:[#allocation6 + $0x70] sm:$0xff]  ;;  %v54_v5 = vmul.f32 %v374_v1, %v374_v1  ;;  %v92_v6 = vld [vmem:[#allocation6 + $0x68] sm:$0xff]  ;;  %s192_s25 = sshll.u32 %s339_s24, 4  ;;  %s193_s25 = int_to_ptr.vmem [resolvable:$true] %s192_s25 }
  0x1e   :  { %225 = vmatprep.subr.mxu0 %v94_v2  ;;  %v91_v7 = vld [vmem:[#allocation6 + $0x60] sm:$0xff]  ;;  %v90_v8 = vld [vmem:[#allocation6 + $0x58] sm:$0xff]  ;;  %v89_v9 = vld [vmem:[#allocation6 + $0x50] sm:$0xff]  ;;  %s309_s26 = scalar_lea.vmem %s193_s25, 256  ;;  %p314_p11 = scmp.lt.s32.totalorder %s193_s25, %s193_s25 }
  0x1f   :  { %226 = vmatpush3.msra.mxu0 %v94_v2  ;;  %55 = vadd.xlane.f32.xlu1 %v53_v3  ;;  %v88_v10 = vld [vmem:[#allocation6 + $0x48] sm:$0xff]  ;;  %v87_v11 = vld [vmem:[#allocation6 + $0x40] sm:$0xff]  ;;  %v86_v12 = vld [vmem:[#allocation6 + $0x38] sm:$0xff]  ;;  %p310_p10 = scmp.ne.s32.totalorder %s193_s25, %s309_s26  ;;  %p315_p12 = scmp.lt.s32.totalorder %s309_s26, %s309_s26 }
  0x20   :  { %227 = vmatprep.subr.mxu0 %v93_v4  ;;  %v85_v13 = vld [vmem:[#allocation6 + $0x30] sm:$0xff]  ;;  %v84_v14 = vld [vmem:[#allocation6 + $0x28] sm:$0xff]  ;;  %v83_v15 = vld [vmem:[#allocation6 + $0x20] sm:$0xff] }
  0x21   :  { %228 = vmatpush3.msra.mxu0 %v93_v4  ;;  %51 = vadd.xlane.f32.xlu0 %v374_v1  ;;  %v82_v16 = vld [vmem:[#allocation6 + $0x18] sm:$0xff]  ;;  %v81_v17 = vld [vmem:[#allocation6 + $0x10] sm:$0xff]  ;;  %v80_v18 = vld [vmem:[#allocation6 + $0x8] sm:$0xff]  ;;  %p316_p13 = por %p315_p12, %p314_p11 }
  0x22   :  { %229 = vmatprep.subr.mxu0 %v92_v6  ;;  %v79_v19 = vld [vmem:[#allocation6] sm:$0xff]  ;;  %v206_v41 = vld [vmem:[%s397_s2] ss:$0 sm:$0xff] }
  0x23   :  { %57 = vadd.xlane.f32.xlu1 %v54_v5  ;;  %230 = vmatpush3.msra.mxu0 %v92_v6  ;;  %p317_p0 = pnand %p316_p13, %p310_p10 }
  0x24   :  { %231 = vmatprep.subr.mxu0 %v91_v7 }
  0x25   :  { %232 = vmatpush3.msra.mxu0 %v91_v7 }
  0x26   :  { %233 = vmatprep.subr.mxu0 %v90_v8 }
  0x27   :  { %234 = vmatpush3.msra.mxu0 %v90_v8 }
  0x28   :  { %235 = vmatprep.subr.mxu0 %v89_v9 }
  0x29   :  { %236 = vmatpush3.msra.mxu0 %v89_v9 }
  0x2a   :  { %237 = vmatprep.subr.mxu0 %v88_v10 }
  0x2b   :  { %238 = vmatpush3.msra.mxu0 %v88_v10 }
  0x2c   :  { %239 = vmatprep.subr.mxu0 %v87_v11 }
  0x2d   :  { %240 = vmatpush3.msra.mxu0 %v87_v11 }
  0x2e   :  { %241 = vmatprep.subr.mxu0 %v86_v12 }
  0x2f   :  { %242 = vmatpush3.msra.mxu0 %v86_v12 }
  0x30   :  { %243 = vmatprep.subr.mxu0 %v85_v13 }
  0x31   :  { %244 = vmatpush3.msra.mxu0 %v85_v13 }
  0x32   :  { %245 = vmatprep.subr.mxu0 %v84_v14 }
  0x33   :  { %246 = vmatpush3.msra.mxu0 %v84_v14 }
  0x34   :  { %247 = vmatprep.subr.mxu0 %v83_v15 }
  0x35   :  { %248 = vmatpush3.msra.mxu0 %v83_v15 }
  0x36   :  { %249 = vmatprep.subr.mxu0 %v82_v16 }
  0x37   :  { %250 = vmatpush3.msra.mxu0 %v82_v16 }
  0x38   :  { %251 = vmatprep.subr.mxu0 %v81_v17 }
  0x39   :  { %252 = vmatpush3.msra.mxu0 %v81_v17 }
  0x3a   :  { %253 = vmatprep.subr.mxu0 %v80_v18 }
  0x3b   :  { %254 = vmatpush3.msra.mxu0 %v80_v18 }
  0x3c   :  { %255 = vmatprep.subr.mxu0 %v79_v19 }
  0x3d   :  { %256 = vmatpush3.msra.mxu0 %v79_v19 }
  0xa6   :  { %v50_v20 = vpop.xlane.xlu0 %49 }
  0xa7   :  { %v59_v21 = vmul.f32 0.0078125, %v50_v20 }
  0xa8   :  { %v56_v22 = vpop.xlane.xlu1 %55 }
  0xa9   :  { %v63_v23 = vmul.f32 %v59_v21, %v59_v21  ;;  %v61_v24 = vmul.f32 0.0078125, %v56_v22  ;;  %v71_v34 = vsub.f32 %v372_v0, %v59_v21 }
  0xaa   :  { %v52_v25 = vpop.xlane.xlu0 %51 }
  0xab   :  { %v65_v26 = vsub.f32 %v61_v24, %v63_v23  ;;  %v60_v27 = vmul.f32 0.0078125, %v52_v25 }
  0xac   :  { %v58_v28 = vpop.xlane.xlu1 %57 }
  0xad   :  { %v67_v29 = vadd.f32 1e-05, %v65_v26  ;;  %v64_v30 = vmul.f32 %v60_v27, %v60_v27  ;;  %v62_v31 = vmul.f32 0.0078125, %v58_v28  ;;  %v72_v37 = vsub.f32 %v374_v1, %v60_v27 }
  0xaf   :  { %265 = vrsqrt.f32 %v67_v29  ;;  %v66_v32 = vsub.f32 %v62_v31, %v64_v30 }
  0xb1   :  { %v68_v33 = vadd.f32 1e-05, %v66_v32 }
  0xb3   :  { %267 = vrsqrt.f32 %v68_v33 }
  0xbc   :  { %v266_v35 = vpop.eup %265 }
  0xbd   :  { %v73_v36 = vmul.f32 %v266_v35, %v71_v34 }
  0xbf   :  { %257 = vmatprep.mubr.f32.mxu0 %v73_v36 }
  0xc0   :  { %v268_v38 = vpop.eup %267 }
  0xc1   :  { %v74_v39 = vmul.f32 %v268_v38, %v72_v37 }
  0xc3   :  { %258 = vmatmul.mubr.f32.vlgmr.msra.gmra.mxu0 %v74_v39 }
 0x183   :  { %v259_v40 = vpop.f32.mrf.mxu0 }
 0x184   :  { %v173_v42 = vadd.f32 %v259_v40, %v374_v1 }
 0x185   :  { %v167_v43 = vpop.f32.mrf.mxu0 }
 0x186   :  { %v184_v44 = vadd.f32 %v206_v41, %v173_v42  ;;  %v168_v45 = vadd.f32 %v167_v43, %v372_v0 }
 0x188   :  { %186 = vst [vmem:[#allocation8 + $0x8] sm:$0xff] %v184_v44  ;;  %v183_v46 = vadd.f32 %v206_v41, %v168_v45 }
 0x18a   :  { %185 = vst [vmem:[#allocation8] sm:$0xff] %v183_v46 }
 0x18b   :  { %320 = shalt.err (!%p317_p0)
}
 0x18c   :  { %198 = dma.vmem_to_hbm [thread:$0]  %s193_s25, 256, %s398_s3, [#allocation5], %s336_s15, %s336_s15, %s337_s16  }
 0x18d   :  { %333 = dma.done.wait [#allocation5], 256  }
 0x18e   :  { %334 = vsyncadd [#allocation5], 4294967040 }
 0x18f   :  { %202 = vsyncpa [#allocation4], 1 }
 0x190   :  { %203 = vsyncpa [#allocation7], 1 }
 0x191   :  { %204 = vsyncpa [#allocation5], 1 }

</bundles_post_ra>
